<compile_context>
chip_gen: v5e
topology: v5e:2x2
jax: 0.10.0
libtpu: 0.0.40
codegen_flags: <defaults>
</compile_context>

<pallas_src>
import functools

import jax
import jax.numpy as jnp
from jax import lax
from jax.experimental import pallas as pl
from jax.experimental.pallas import tpu as pltpu


# ---------------------------------------------------------------------------
# Fused single-pass kernel: squeeze + excite + scale for a full-L batch tile
# ---------------------------------------------------------------------------
def _se_fused_kernel(x_ref, w1t_ref, b1_ref, w2t_ref, b2_ref, o_ref, *, true_l):
    x = x_ref[...]                                            # (bt, C, L)
    # Squeeze: mean over L, accumulated in f32.
    y = jnp.sum(x.astype(jnp.float32), axis=-1) * (1.0 / true_l)   # (bt, C)
    # Excitation MLP; weights pre-transposed -> canonical contraction dims.
    h = jnp.maximum(
        jnp.dot(y, w1t_ref[...], preferred_element_type=jnp.float32)
        + b1_ref[...], 0.0)
    z = (jnp.dot(h, w2t_ref[...], preferred_element_type=jnp.float32)
         + b2_ref[...])
    s = jax.nn.sigmoid(z).astype(x.dtype)                     # (bt, C)
    # Scale and write once: total HBM traffic = read x + write out (2x).
    o_ref[...] = (x * s[:, :, None]).astype(o_ref.dtype)


# ---------------------------------------------------------------------------
# Fallback pass 1: tiled sum over L + excitation -> gates s of shape (B, C, 1)
# ---------------------------------------------------------------------------
def _squeeze_excite_kernel(x_ref, w1t_ref, b1_ref, w2t_ref, b2_ref, s_ref,
                           acc_ref, *, true_l, l_tile):
    l = pl.program_id(1)
    n_l = pl.num_programs(1)

    @pl.when(l == 0)
    def _():
        acc_ref[...] = jnp.zeros_like(acc_ref)

    x = x_ref[...].astype(jnp.float32)                        # (bt, C, lt)

    if true_l % l_tile != 0:
        # Only the final L tile has a padded tail: gate the mask there and use
        # a cheap (1, 1, lt) lane iota instead of a full-tile int32 iota.
        @pl.when(l == n_l - 1)
        def _():
            lane = lax.broadcasted_iota(jnp.int32, (1, 1, l_tile), 2)
            valid = (l * l_tile + lane) < true_l
            acc_ref[...] += jnp.sum(jnp.where(valid, x, 0.0), axis=-1)

        @pl.when(l < n_l - 1)
        def _():
            acc_ref[...] += jnp.sum(x, axis=-1)
    else:
        acc_ref[...] += jnp.sum(x, axis=-1)

    @pl.when(l == n_l - 1)
    def _():
        # Mean over the *true* L, then the tiny MLP -- once per batch tile.
        y = acc_ref[...] * (1.0 / true_l)                     # (bt, C) f32
        h = jnp.maximum(
            jnp.dot(y, w1t_ref[...], preferred_element_type=jnp.float32)
            + b1_ref[...], 0.0)
        z = (jnp.dot(h, w2t_ref[...], preferred_element_type=jnp.float32)
             + b2_ref[...])
        s_ref[...] = jax.nn.sigmoid(z)[:, :, None].astype(s_ref.dtype)


# ---------------------------------------------------------------------------
# Fallback pass 2: scale x by the per-channel gates
# ---------------------------------------------------------------------------
def _scale_kernel(x_ref, s_ref, o_ref):
    s = s_ref[...].astype(x_ref.dtype)                        # (bt, C, 1)
    o_ref[...] = (x_ref[...] * s).astype(o_ref.dtype)


# ---------------------------------------------------------------------------
# Wrapper
# ---------------------------------------------------------------------------
def _vmem_limit_bytes():
    """Request ~75% of per-core VMEM: ~48 MiB on v7x, ~96 MiB on v5e/v6e."""
    phys = 64 * 1024 * 1024
    try:
        phys = int(pltpu.get_tpu_info().vmem_capacity_bytes)
    except Exception:
        pass
    return max(32 * 1024 * 1024, min(int(0.75 * phys), 96 * 1024 * 1024))


def se_block(x, w1, b1, w2, b2, *, b_tile=None, l_tile=None,
             force_two_pass=False):
    """SE block forward.

    x:  (B, C, L)
    w1: (C//r, C), b1: (C//r,)   -- PyTorch nn.Linear (out, in) layout
    w2: (C, C//r), b2: (C,)
    """
    B, C, L = x.shape
    Cr = w1.shape[0]
    # Pre-transpose weights so both dots contract on canonical dims (no XLU
    # transpose in the kernel). Biases become 2-D for clean broadcasting.
    w1t = jnp.transpose(w1)            # (C, Cr)
    w2t = jnp.transpose(w2)            # (Cr, C)
    b1_2d = b1.reshape(1, Cr)
    b2_2d = b2.reshape(1, C)

    itemsize = jnp.dtype(x.dtype).itemsize
    vmem_limit = _vmem_limit_bytes()
    # Constant-index weight blocks still get double-buffered by the pipeline.
    # TODO(synk): for very large C (>= ~4k) load weights once via pl.ANY +
    # one-time async copy instead of double-buffering them.
    w_resident = 2 * ((C * Cr * 2 + C + Cr) * 4)
    budget = max(int(0.70 * vmem_limit) - w_resident, 2 * 1024 * 1024)

    # ---------------- fused single-pass path (preferred) ----------------
    row_bytes = C * L * itemsize              # one batch row of x
    fused_bt = 0 if force_two_pass else budget // (4 * row_bytes)
    if fused_bt >= 1:
        bt = int(min(B, fused_bt)) if b_tile is None else int(b_tile)
        if b_tile is None and B >= 2:
            bt = min(bt, pl.cdiv(B, 2))       # >=2 tiles -> v7x megacore shard
        bt = max(1, min(bt, B))
        n_b = pl.cdiv(B, bt)
        x_spec = pl.BlockSpec((bt, C, L), lambda b: (b, 0, 0))
        return pl.pallas_call(
            functools.partial(_se_fused_kernel, true_l=L),
            out_shape=jax.ShapeDtypeStruct((B, C, L), x.dtype),
            grid=(n_b,),
            in_specs=[
                x_spec,
                pl.BlockSpec((C, Cr), lambda b: (0, 0)),
                pl.BlockSpec((1, Cr), lambda b: (0, 0)),
                pl.BlockSpec((Cr, C), lambda b: (0, 0)),
                pl.BlockSpec((1, C), lambda b: (0, 0)),
            ],
            out_specs=x_spec,
            compiler_params=pltpu.CompilerParams(
                dimension_semantics=("parallel",),
                vmem_limit_bytes=vmem_limit),
        )(x, w1t, b1_2d, w2t, b2_2d)

    # ---------------- two-pass fallback (full-L slab too big) ----------------
    if l_tile is None:
        if L % 128 == 0:
            lt = min(L, 2048)                 # lane-dense, 2-4+ MiB tiles
        elif L > 2048:
            lt = 2048                         # partial last tile, masked
        else:
            lt = L                            # full-L block satisfies lane rule
    else:
        lt = int(l_tile)
    if b_tile is None:
        bt = min(B, 8)
        if B >= 2:
            bt = min(bt, pl.cdiv(B, 2))       # >=2 batch tiles for v7x
    else:
        bt = int(b_tile)
    bt = max(1, min(bt, B))

    def x_tile_bytes(bt_, lt_):
        return bt_ * C * lt_ * itemsize

    # Pass 2 double-buffers both the x input tile and the output tile.
    while bt > 1 and 4 * x_tile_bytes(bt, lt) > budget:
        bt = max(1, bt // 2)
    while lt > 128 and 4 * x_tile_bytes(bt, lt) > budget:
        lt = max(128, (lt // 2) // 128 * 128)

    n_b = pl.cdiv(B, bt)
    n_l = pl.cdiv(L, lt)

    x_spec = pl.BlockSpec((bt, C, lt), lambda b, l: (b, 0, l))
    s_spec = pl.BlockSpec((bt, C, 1), lambda b, l: (b, 0, 0))

    # ---- pass 1: squeeze + excite -> gates s (B, C, 1), f32 ----
    s = pl.pallas_call(
        functools.partial(_squeeze_excite_kernel, true_l=L, l_tile=lt),
        out_shape=jax.ShapeDtypeStruct((B, C, 1), jnp.float32),
        grid=(n_b, n_l),
        in_specs=[
            x_spec,
            pl.BlockSpec((C, Cr), lambda b, l: (0, 0)),
            pl.BlockSpec((1, Cr), lambda b, l: (0, 0)),
            pl.BlockSpec((Cr, C), lambda b, l: (0, 0)),
            pl.BlockSpec((1, C), lambda b, l: (0, 0)),
        ],
        out_specs=s_spec,
        scratch_shapes=[pltpu.VMEM((bt, C), jnp.float32)],
        compiler_params=pltpu.CompilerParams(
            dimension_semantics=("parallel", "arbitrary"),
            vmem_limit_bytes=vmem_limit),
    )(x, w1t, b1_2d, w2t, b2_2d)

    # ---- pass 2: scale, fully parallel over (B tiles, L tiles) ----
    out = pl.pallas_call(
        _scale_kernel,
        out_shape=jax.ShapeDtypeStruct((B, C, L), x.dtype),
        grid=(n_b, n_l),
        in_specs=[x_spec, s_spec],
        out_specs=x_spec,
        compiler_params=pltpu.CompilerParams(
            dimension_semantics=("parallel", "parallel"),
            vmem_limit_bytes=vmem_limit),
    )(x, s)
    return out


def se_block_ref(x, w1, b1, w2, b2):
    """Plain-JAX reference mirroring the PyTorch forward."""
    y = jnp.mean(x, axis=-1)
    h = jnp.maximum(y @ w1.T + b1, 0.0)
    s = jax.nn.sigmoid(h @ w2.T + b2)
    return x * s[:, :, None]


def _make_params(key, C, reduction):
    Cr = C // reduction
    kw1, kb1, kw2, kb2 = jax.random.split(key, 4)
    lim1 = 1.0 / jnp.sqrt(C)
    w1 = jax.random.uniform(kw1, (Cr, C), minval=-lim1, maxval=lim1,
                            dtype=jnp.float32)
    b1 = jax.random.uniform(kb1, (Cr,), minval=-lim1, maxval=lim1,
                            dtype=jnp.float32)
    lim2 = 1.0 / jnp.sqrt(Cr)
    w2 = jax.random.uniform(kw2, (C, Cr), minval=-lim2, maxval=lim2,
                            dtype=jnp.float32)
    b2 = jax.random.uniform(kb2, (C,), minval=-lim2, maxval=lim2,
                            dtype=jnp.float32)
    return w1, b1, w2, b2


if __name__ == "__main__":
    key = jax.random.PRNGKey(0)
    k1, k2, k3, kp1, kp2, kp3 = jax.random.split(key, 6)

    # Case 1 (primary, module-sized): (B, C, L) = (2, 32, 16), reduction=8.
    B, C, L = 2, 32, 16
    x = jax.random.normal(k1, (B, C, L), dtype=jnp.float32)
    w1, b1, w2, b2 = _make_params(kp1, C, reduction=8)
    out = jax.block_until_ready(se_block(x, w1, b1, w2, b2))
    ref = se_block_ref(x, w1, b1, w2, b2)
    assert out.shape == (B, C, L)
    assert jnp.allclose(out, ref, atol=1e-5, rtol=1e-5)

    # Case 2: fused path with lane-dense L and >=2 batch tiles.
    B2, C2, L2 = 4, 32, 1024
    x2 = jax.random.normal(k2, (B2, C2, L2), dtype=jnp.float32)
    w1b, b1b, w2b, b2b = _make_params(kp2, C2, reduction=8)
    out2 = jax.block_until_ready(se_block(x2, w1b, b1b, w2b, b2b))
    ref2 = se_block_ref(x2, w1b, b1b, w2b, b2b)
    assert out2.shape == (B2, C2, L2)
    assert jnp.allclose(out2, ref2, atol=1e-5, rtol=1e-5)

    # Case 3: exercise the two-pass fallback (tiled L reduction + masked tail).
    B3, C3, L3 = 4, 32, 1152          # 1152 = 2*512 + 128 -> partial last tile
    x3 = jax.random.normal(k3, (B3, C3, L3), dtype=jnp.float32)
    w1c, b1c, w2c, b2c = _make_params(kp3, C3, reduction=8)
    out3 = jax.block_until_ready(
        se_block(x3, w1c, b1c, w2c, b2c, force_two_pass=True, l_tile=512))
    ref3 = se_block_ref(x3, w1c, b1c, w2c, b2c)
    assert out3.shape == (B3, C3, L3)
    assert jnp.allclose(out3, ref3, atol=1e-5, rtol=1e-5)

    print("KERNEL_OK")
</pallas_src>

<mosaic_0001>
module attributes {stable_mosaic.version = 11 : i64} {
  func.func @_se_fused_kernel(%arg0: i32, %arg1: memref<1x32x16xf32, #tpu.memory_space<vmem>>, %arg2: memref<32x4xf32, #tpu.memory_space<vmem>>, %arg3: memref<1x4xf32, #tpu.memory_space<vmem>>, %arg4: memref<4x32xf32, #tpu.memory_space<vmem>>, %arg5: memref<1x32xf32, #tpu.memory_space<vmem>>, %arg6: memref<1x32x16xf32, #tpu.memory_space<vmem>>) attributes {dimension_semantics = [#tpu.dimension_semantics<parallel>], iteration_bounds = array<i64: 2>, scalar_prefetch = 0 : i64, scratch_operands = 0 : i64, tpu.core_type = #tpu.core_type<tc>, window_params = [{transform_indices = @transform_0, window_bounds = array<i64: 1, 32, 16>}, {pipeline_mode = #tpu.pipeline_mode<synchronous>, transform_indices = @transform_1, window_bounds = array<i64: 32, 4>}, {pipeline_mode = #tpu.pipeline_mode<synchronous>, transform_indices = @transform_2, window_bounds = array<i64: 1, 4>}, {pipeline_mode = #tpu.pipeline_mode<synchronous>, transform_indices = @transform_3, window_bounds = array<i64: 4, 32>}, {pipeline_mode = #tpu.pipeline_mode<synchronous>, transform_indices = @transform_4, window_bounds = array<i64: 1, 32>}, {transform_indices = @transform_5, window_bounds = array<i64: 1, 32, 16>}]} {
    %c0 = arith.constant 0 : index
    %c0_0 = arith.constant 0 : index
    %c0_1 = arith.constant 0 : index
    %0 = vector.load %arg1[%c0, %c0_0, %c0_1] : memref<1x32x16xf32, #tpu.memory_space<vmem>>, vector<1x32x16xf32>
    %cst = arith.constant dense<0.000000e+00> : vector<1x32xf32>
    %1 = vector.multi_reduction <add>, %0, %cst [2] : vector<1x32x16xf32> to vector<1x32xf32>
    %cst_2 = arith.constant 6.250000e-02 : f32
    %2 = vector.broadcast %cst_2 : f32 to vector<1x32xf32>
    %3 = arith.mulf %1, %2 : vector<1x32xf32>
    %c0_3 = arith.constant 0 : index
    %c0_4 = arith.constant 0 : index
    %4 = vector.load %arg2[%c0_3, %c0_4] : memref<32x4xf32, #tpu.memory_space<vmem>>, vector<32x4xf32>
    %cst_5 = arith.constant dense<0.000000e+00> : vector<1x4xf32>
    %5 = tpu.matmul %3, %4, %cst_5 {dimension_numbers = #tpu.dot_dimension_numbers<[1], [0], [0], [1], [0, 0, 1, 1], [], []>} : vector<1x32xf32>, vector<32x4xf32>, vector<1x4xf32> -> vector<1x4xf32>
    %c0_6 = arith.constant 0 : index
    %c0_7 = arith.constant 0 : index
    %6 = vector.load %arg3[%c0_6, %c0_7] : memref<1x4xf32, #tpu.memory_space<vmem>>, vector<1x4xf32>
    %7 = arith.addf %5, %6 : vector<1x4xf32>
    %cst_8 = arith.constant 0.000000e+00 : f32
    %8 = vector.broadcast %cst_8 : f32 to vector<1x4xf32>
    %9 = arith.maximumf %7, %8 : vector<1x4xf32>
    %c0_9 = arith.constant 0 : index
    %c0_10 = arith.constant 0 : index
    %10 = vector.load %arg4[%c0_9, %c0_10] : memref<4x32xf32, #tpu.memory_space<vmem>>, vector<4x32xf32>
    %cst_11 = arith.constant dense<0.000000e+00> : vector<1x32xf32>
    %11 = tpu.matmul %9, %10, %cst_11 {dimension_numbers = #tpu.dot_dimension_numbers<[1], [0], [0], [1], [0, 0, 1, 1], [], []>} : vector<1x4xf32>, vector<4x32xf32>, vector<1x32xf32> -> vector<1x32xf32>
    %c0_12 = arith.constant 0 : index
    %c0_13 = arith.constant 0 : index
    %12 = vector.load %arg5[%c0_12, %c0_13] : memref<1x32xf32, #tpu.memory_space<vmem>>, vector<1x32xf32>
    %13 = arith.addf %11, %12 : vector<1x32xf32>
    %14 = arith.negf %13 : vector<1x32xf32>
    %15 = math.exp %14 : vector<1x32xf32>
    %cst_14 = arith.constant 1.000000e+00 : f32
    %16 = vector.broadcast %cst_14 : f32 to vector<1x32xf32>
    %17 = arith.addf %16, %15 : vector<1x32xf32>
    %18 = arith.divf %16, %17 : vector<1x32xf32>
    %19 = vector.shape_cast %18 : vector<1x32xf32> to vector<1x32x1xf32>
    %20 = vector.broadcast %19 : vector<1x32x1xf32> to vector<1x32x16xf32>
    %21 = arith.mulf %0, %20 : vector<1x32x16xf32>
    %c0_15 = arith.constant 0 : index
    %c0_16 = arith.constant 0 : index
    %c0_17 = arith.constant 0 : index
    %22 = vector.load %arg6[%c0_15, %c0_16, %c0_17] : memref<1x32x16xf32, #tpu.memory_space<vmem>>, vector<1x32x16xf32>
    tpu.vector_store %arg6[%c0_15, %c0_16, %c0_17], %21 {strides = array<i32>} : memref<1x32x16xf32, #tpu.memory_space<vmem>>, vector<1x32x16xf32>,
    return
  }
  func.func @transform_0(%arg0: i32) -> (i32, i32, i32) {
    %c0_i32 = arith.constant 0 : i32
    %c0_i32_0 = arith.constant 0 : i32
    %c0_i32_1 = arith.constant 0 : i32
    return %arg0, %c0_i32, %c0_i32_0 : i32, i32, i32
  }
  func.func @transform_1(%arg0: i32) -> (i32, i32) {
    %c0_i32 = arith.constant 0 : i32
    %c0_i32_0 = arith.constant 0 : i32
    %c0_i32_1 = arith.constant 0 : i32
    return %c0_i32, %c0_i32_0 : i32, i32
  }
  func.func @transform_2(%arg0: i32) -> (i32, i32) {
    %c0_i32 = arith.constant 0 : i32
    %c0_i32_0 = arith.constant 0 : i32
    %c0_i32_1 = arith.constant 0 : i32
    return %c0_i32, %c0_i32_0 : i32, i32
  }
  func.func @transform_3(%arg0: i32) -> (i32, i32) {
    %c0_i32 = arith.constant 0 : i32
    %c0_i32_0 = arith.constant 0 : i32
    %c0_i32_1 = arith.constant 0 : i32
    return %c0_i32, %c0_i32_0 : i32, i32
  }
  func.func @transform_4(%arg0: i32) -> (i32, i32) {
    %c0_i32 = arith.constant 0 : i32
    %c0_i32_0 = arith.constant 0 : i32
    %c0_i32_1 = arith.constant 0 : i32
    return %c0_i32, %c0_i32_0 : i32, i32
  }
  func.func @transform_5(%arg0: i32) -> (i32, i32, i32) {
    %c0_i32 = arith.constant 0 : i32
    %c0_i32_0 = arith.constant 0 : i32
    %c0_i32_1 = arith.constant 0 : i32
    return %arg0, %c0_i32, %c0_i32_0 : i32, i32, i32
  }
}

</mosaic_0001>

<bundles_post_ra>
// kernel: tpu_custom_call.1
= control target key start
LH: loop header
LB: loop body
LE: loop exit
PB: predicated region body
PF: predicated region fallthrough
CT: control target
= control target key end

     0   :  { %s503_s18 = smov 0   ;;  %s572_s0 = inlined_call_operand.vmem [shape: f32[2,32,16], index: 0, kind: input, shape index: {}]   ;;  %s573_s1 = inlined_call_operand.vmem [shape: f32[32,4], index: 1, kind: input, shape index: {}]   ;;  %s574_s2 = inlined_call_operand.vmem [shape: f32[1,4], index: 2, kind: input, shape index: {}]   ;;  %s575_s3 = inlined_call_operand.vmem [shape: f32[4,32], index: 3, kind: input, shape index: {}]   ;;  %s576_s4 = inlined_call_operand.vmem [shape: f32[1,32], index: 4, kind: input, shape index: {}]   ;;  %s577_s5 = inlined_call_operand.vmem [shape: f32[2,32,16], index: 5, kind: output, shape index: {}]  }
   0x1 LB: > { %s431_s19 = sadd.s32 4294967295, %s471_s18   ;;  %p435_p0 = scmp.ge.s32.totalorder %s471_s18, 1  ;;  %s471_s18 = sphi %s503_s18, %s15_s18  }
   0x2   : > { %p187_p1 = scmp.lt.s32.totalorder %s471_s18, 3 }
   0x4   : > { %p188_p2 = pnand %p435_p0, %p187_p1 }
   0x5   : > { %p215_p3 = scmp.lt.s32.totalorder (!%p188_p2), %s431_s19, 1 }
   0x6   : > { %191 = sbr.rel (%p188_p2) target bundleno = 554 (0x22a), region = 40 }
   0xb   : > { %s579_s19 = smov (!%p215_p3, %s431_s19), 1  ;;  %vm229_vm0 = vcmask 130048   ;;  %v249_v8 = vld [vmem:[%s573_s1 + $0x18] sm:$0xff]  ;;  %v248_v9 = vld [vmem:[%s573_s1 + $0x10] sm:$0xff]  ;;  %v247_v10 = vld [vmem:[%s573_s1 + $0x8] sm:$0xff]  ;;  %v255_v12 = vlaneseq  ;;  %vm260_vm1 = vcmask 130112  }
   0xc   : > { %s446_s20 = sshll.u32 %s579_s19, 5  ;;  %285 = vmatpush.msra.mxu0 %v249_v8  ;;  %v246_v11 = vld [vmem:[%s573_s1] sm:$0xff]  ;;  %vm264_vm2 = vcmask 195712   ;;  %vm268_vm3 = vcmask 261312   ;;  %vm270_vm4 = vcmask 261120   ;;  %vm300_vm5 = vcmask 1043456  }
   0xd   : > { %s219_s23 = scalar_lea.vmem %s572_s0, %s446_s20  ;;  %v256_v15 = vand.u32 127, %v255_v12  ;;  %v294_v32 = vld [vmem:[%s575_s3] sm:$0xf]  ;;  %vm296_vm6 = vcmask 31744   ;;  %v345_v37 = vshrl.u32 %v255_v12, 7  ;;  %s224_s15 = scalar_lea.vmem %s577_s5, %s446_s20 }
   0xe   : > { %v519_v0 = vld [vmem:[%s219_s23] sm:$0xff]  ;;  %v521_v1 = vld [vmem:[%s219_s23 + $0x10] sm:$0xff]  ;;  %v527_v4 = vld [vmem:[%s219_s23 + $0x8] sm:$0xff]  ;;  %286 = vmatpush.msra.mxu0 %v248_v9  ;;  %441 = vmatpush.msk.msra.mxu1 %vm300_vm5, %v294_v32 }
   0xf   : > { %v230_v2 = vsel %vm229_vm0, %v519_v0, 0.0  ;;  %v236_v3 = vsel %vm229_vm0, %v521_v1, 0.0  ;;  %v529_v5 = vld [vmem:[%s219_s23 + $0x18] sm:$0xff]  ;;  %v233_v6 = vsel %vm229_vm0, %v527_v4, 0.0  ;;  %v258_v17 = vadd.s32 4294967288, %v256_v15  ;;  %456 = vset.pattern.permute.xlu2 %v345_v37 }
  0x10   : > { %231 = vadd.xlane.f32.xlu0 %v230_v2  ;;  %237 = vadd.xlane.f32.xlu1 %v236_v3  ;;  %v239_v7 = vsel %vm229_vm0, %v529_v5, 0.0  ;;  %v266_v18 = vadd.s32 4294967272, %v256_v15  ;;  %v262_v19 = vadd.s32 4294967280, %v256_v15  ;;  %v250_v33 = vld [vmem:[%s574_s2] sm:$0x1]  ;;  %v364_v38 = vadd.s32 24, %v345_v37 }
  0x11   : > { %287 = vmatpush.msra.mxu0 %v247_v10  ;;  %v358_v39 = vadd.s32 16, %v345_v37  ;;  %v295_v40 = vld [vmem:[%s576_s4] sm:$0x1]  ;;  %v352_v57 = vadd.s32 8, %v345_v37 }
  0x12   : > { %459 = vset.pattern.permute.xlu1 %v364_v38 }
  0x13   : > { %288 = vmatpush.msra.mxu0 %v246_v11  ;;  %458 = vset.pattern.permute.xlu0 %v358_v39 }
  0x18   : > { %234 = vadd.xlane.f32.xlu0 %v233_v6  ;;  %240 = vadd.xlane.f32.xlu1 %v239_v7 }
  0x83   : > { %v232_v13 = vpop.xlane.xlu0 %231  ;;  %v238_v14 = vpop.xlane.xlu1 %237 }
  0x84   : > { %v242_v16 = vmul.f32 0.0625, %v232_v13  ;;  %v244_v20 = vmul.f32 0.0625, %v238_v14 }
  0x86   : > { %v257_v25 = vperm.slane %v242_v16, %v256_v15  ;;  %v263_v28 = vperm.slane %v244_v20, %v262_v19 }
  0x8b   : > { %v235_v21 = vpop.xlane.xlu0 %234  ;;  %v241_v22 = vpop.xlane.xlu1 %240 }
  0x8c   : > { %v243_v23 = vmul.f32 0.0625, %v235_v21  ;;  %v245_v24 = vmul.f32 0.0625, %v241_v22 }
  0x8e   : > { %v259_v26 = vperm.slane %v243_v23, %v258_v17  ;;  %v267_v27 = vperm.slane %v245_v24, %v266_v18 }
  0x90   : > { %v261_v29 = vsel %vm260_vm1, %v259_v26, %v257_v25 }
  0x91   : > { %v265_v30 = vsel %vm264_vm2, %v263_v28, %v261_v29 }
  0x92   : > { %v269_v31 = vsel %vm268_vm3, %v267_v27, %v265_v30 }
  0x93   : > { %440 = vmatmul.msk.f32.vlgmr.msra.gmra.mxu0 %vm270_vm4, %v269_v31 }
 0x110   : > { %v290_v34 = vpop.f32.mrf.mxu0 }
 0x111   : > { %v291_v35 = vadd.f32 %v290_v34, %v250_v33 }
 0x113   : > { %v293_v36 = vmax.f32 %v291_v35, 0.0 }
 0x115   : > { %442 = vmatmul.msk.f32.vlgmr.msra.gmra.mxu1 %vm296_vm6, %v293_v36 }
 0x192   : > { %v321_v41 = vpop.f32.mrf.mxu1 }
 0x193   : > { %v322_v42 = vadd.f32 %v321_v41, %v295_v40 }
 0x195   : > { %v443_v43 = vmul.f32 -1.442695, %v322_v42 }
 0x197   : > { %461 = vpow2.f32 %v443_v43 }
 0x19d   : > { %v462_v44 = vpop.eup %461 }
 0x19e   : > { %v327_v45 = vadd.f32 1.0, %v462_v44 }
 0x1a0   : > { %463 = vrcp.f32 %v327_v45  ;;  %v339_v49 = vand.u32 2147483648, %v327_v45  ;;  %v337_v51 = vand.u32 2147483647, %v327_v45  ;;  %vm333_vm8 = vweird.f32 %v327_v45 }
 0x1a2   : > { %v340_v53 = vor.u32 1.1754944e-38, %v339_v49  ;;  %vm338_vm10 = vcmp.eq.f32.partialorder %v337_v51, 8.507059e+37 }
 0x1a6   : > { %v464_v46 = vpop.eup %463 }
 0x1a7   : > { %v329_v47 = vmul.f32 %v464_v46, %v327_v45  ;;  %vm334_vm7 = vweird.f32 %v464_v46 }
 0x1a8   : > { %vm335_vm9 = vmor %vm333_vm8, %vm334_vm7 }
 0x1a9   : > { %v330_v48 = vsub.f32 1.0, %v329_v47 }
 0x1ab   : > { %v331_v50 = vmul.f32 %v464_v46, %v330_v48 }
 0x1ad   : > { %v332_v52 = vadd.f32 %v464_v46, %v331_v50 }
 0x1af   : > { %v336_v54 = vsel %vm335_vm9, %v464_v46, %v332_v52 }
 0x1b0   : > { %v341_v55 = vsel %vm338_vm10, %v340_v53, %v336_v54 }
 0x1b1   : > { %v343_v56 = vperm.slane %v341_v55, 0 }
 0x1b3   : > { %366 = vperm.xlu1 %459, %v343_v56   ;;  %360 = vperm.xlu0 %458, %v343_v56  }
 0x1b4   : > { %348 = vperm.xlu2 %456, %v343_v56  }
 0x1bb   : > { %460 = vset.pattern.permute.xlu0 %v364_v38 }
 0x1bc   : > { %457 = vset.pattern.permute.xlu2 %v352_v57 }
 0x1c4   : > { %354 = vperm.xlu2 %457, %v343_v56  }
 0x20e   : > { %v349_v58 = vpop.permute.xlu2 %348 }
 0x20f   : > { %v368_v59 = vmul.f32 %v349_v58, %v519_v0 }
 0x211   : > { %372 = vst.msk [vmem:[%s224_s15] sm:$0xff] %vm229_vm0, %v368_v59 }
 0x21e   : > { %v355_v60 = vpop.permute.xlu2 %354 }
 0x21f   : > { %v369_v61 = vmul.f32 %v355_v60, %v527_v4 }
 0x221   : > { %373 = vst.msk [vmem:[%s224_s15 + $0x8] sm:$0xff] %vm229_vm0, %v369_v61 }
 0x225   : > { %v367_v62 = vpop.permute.xlu1 %366  ;;  %v361_v63 = vpop.permute.xlu0 %360 }
 0x226   : > { %v371_v2 = vmul.f32 %v367_v62, %v529_v5  ;;  %v370_v3 = vmul.f32 %v361_v63, %v521_v1 }
 0x228   : > { %375 = vst.msk [vmem:[%s224_s15 + $0x18] sm:$0xff] %vm229_vm0, %v371_v2 }
 0x229   : > { %374 = vst.msk [vmem:[%s224_s15 + $0x10] sm:$0xff] %vm229_vm0, %v370_v3 }
 0x22a PF: > { %s15_s18 = sadd.s32 1, %s471_s18  }
 0x22b   : > { %p12_p4 = scmp.ge.s32.totalorder %s15_s18, 4  }
 0x22d   :  { %14 = sbr.rel (!%p12_p4) target bundleno = 1 (0x1), region = 70 }

</bundles_post_ra>
